<compile_context>
chip_gen: v6e
topology: v6e:2x2x1
jax: 0.10.0
libtpu: 0.0.40
codegen_flags: <defaults>
</compile_context>

<pallas_src>
import jax
import jax.numpy as jnp
from jax import lax
from jax.experimental import pallas as pl
from jax.experimental.pallas import tpu as pltpu

EPS = 1e-5
_MIB = 1024 * 1024


def _round_up(a, b):
    return ((a + b - 1) // b) * b


def _vmem_limit_bytes():
    """Generation-aware scoped-VMEM budget (v5e/v6e: 128 MiB phys, v7x: 64 MiB)."""
    try:
        cap = int(pltpu.get_tpu_info().vmem_capacity_bytes)
    except Exception:
        cap = 64 * _MIB  # conservative fallback (v7x per-TC)
    if cap >= 96 * _MIB:
        return 100 * _MIB
    return 32 * _MIB


def pack_params(params, num_classes):
    """One-time packing: pad to lane-dense widths, cast weights to bf16."""
    in_channels, out_channels = params["w1"].shape
    ocp = _round_up(out_channels, 128)      # lane-dense hidden width
    ncp = _round_up(num_classes, 128)       # lane-dense logits width
    wv = max(ocp, ncp)

    w1p = jnp.pad(params["w1"].astype(jnp.float32), ((0, 0), (0, ocp - out_channels)))
    w2p = jnp.pad(params["w2"].astype(jnp.float32),
                  ((0, ocp - out_channels), (0, ocp - out_channels)))
    w3p = jnp.pad(params["w3"].astype(jnp.float32),
                  ((0, ocp - out_channels), (0, ncp - num_classes)))

    def row(v, width):
        v = v.reshape(-1).astype(jnp.float32)
        return jnp.pad(v, (0, width - v.shape[0]))

    # Packed per-layer vector slab: one (8, wv) DMA instead of 7 tiny ones.
    vec = jnp.stack([
        row(params["b1"], wv), row(params["g1"], wv), row(params["be1"], wv),
        row(params["b2"], wv), row(params["g2"], wv), row(params["be2"], wv),
        row(params["b3"], wv), jnp.zeros((wv,), jnp.float32)])

    return dict(
        w1=w1p.astype(jnp.bfloat16),
        w2=w2p.astype(jnp.bfloat16),
        w3=w3p.astype(jnp.bfloat16),
        vec=vec,
        b1=vec[0:1, :ocp], g1=vec[1:2, :ocp], be1=vec[2:3, :ocp],
        b2=vec[3:4, :ocp], g2=vec[4:5, :ocp], be2=vec[5:6, :ocp],
        b3=vec[6:7, :ncp],
        in_channels=in_channels, out_channels=out_channels, ocp=ocp, ncp=ncp,
    )


# ----------------------------------------------------------------------------
# Path 1: whole batch resident in VMEM (single program, one-pass BN stats).
# ----------------------------------------------------------------------------
def _single_block_forward(x2d, p, vmem_limit):
    n, in_ch = x2d.shape
    ocp, ncp = p["ocp"], p["ncp"]
    inv_n = 1.0 / n

    def kernel(x_ref, w1_ref, w2_ref, w3_ref, vec_ref, o_ref):
        vec = vec_ref[...]                                   # (8, wv) f32
        b1, g1, be1 = vec[0:1, :ocp], vec[1:2, :ocp], vec[2:3, :ocp]
        b2, g2, be2 = vec[3:4, :ocp], vec[4:5, :ocp], vec[5:6, :ocp]
        b3 = vec[6:7, :ncp]

        def bn_relu(h, gamma, beta):
            # One-pass batch statistics + folded scale/shift (f32 throughout).
            s1 = jnp.sum(h, axis=0, keepdims=True)
            s2 = jnp.sum(h * h, axis=0, keepdims=True)
            mean = s1 * inv_n
            var = jnp.maximum(s2 * inv_n - mean * mean, 0.0)  # clamp cancellation
            scale = gamma * lax.rsqrt(var + EPS)
            shift = beta - mean * scale
            return jnp.maximum(h * scale + shift, 0.0)

        x = x_ref[...].astype(jnp.bfloat16)                   # in-kernel cast (VPU)
        h = jnp.dot(x, w1_ref[...], preferred_element_type=jnp.float32) + b1
        h = bn_relu(h, g1, be1)
        h = jnp.dot(h.astype(jnp.bfloat16), w2_ref[...],
                    preferred_element_type=jnp.float32) + b2
        h = bn_relu(h, g2, be2)
        o_ref[...] = jnp.dot(h.astype(jnp.bfloat16), w3_ref[...],
                             preferred_element_type=jnp.float32) + b3

    args = (x2d, p["w1"], p["w2"], p["w3"], p["vec"])
    flops = 2 * n * (in_ch * ocp + ocp * ocp + ocp * ncp)
    bytes_accessed = int(x2d.size * 4 + p["vec"].size * 4 + n * ncp * 4
                         + 2 * (p["w1"].size + p["w2"].size + p["w3"].size))
    return pl.pallas_call(
        kernel,
        out_shape=jax.ShapeDtypeStruct((n, ncp), jnp.float32),
        in_specs=[pl.BlockSpec(memory_space=pltpu.VMEM)] * len(args),
        out_specs=pl.BlockSpec(memory_space=pltpu.VMEM),
        compiler_params=pltpu.CompilerParams(vmem_limit_bytes=vmem_limit),
        cost_estimate=pl.CostEstimate(flops=flops, transcendentals=2 * ocp,
                                      bytes_accessed=bytes_accessed),
    )(*args)


# ----------------------------------------------------------------------------
# Path 2: tiled two-pass BN (row-parallel grid; partial sums per tile, folded
# scale/shift between layers).  Uses both TensorCores on v7x.
# ----------------------------------------------------------------------------
def _tiled_forward(x2d, p, vmem_limit, tile_rows):
    n, in_ch = x2d.shape
    ocp, ncp = p["ocp"], p["ncp"]
    nt = pl.cdiv(n, tile_rows)
    inv_n = 1.0 / n

    cparams = pltpu.CompilerParams(dimension_semantics=("parallel",),
                                   vmem_limit_bytes=vmem_limit)

    def row_mask():
        rows = (pl.program_id(0) * tile_rows
                + lax.broadcasted_iota(jnp.int32, (tile_rows, 1), 0))
        return rows < n

    def lin_stats_kernel(x_ref, w_ref, b_ref, y_ref, s1_ref, s2_ref):
        x = x_ref[...].astype(jnp.bfloat16)
        y = jnp.dot(x, w_ref[...], preferred_element_type=jnp.float32) + b_ref[...]
        y_ref[...] = y
        ym = jnp.where(row_mask(), y, 0.0)
        s1_ref[...] = jnp.sum(ym, axis=0, keepdims=True).reshape(1, 1, ocp)
        s2_ref[...] = jnp.sum(ym * ym, axis=0, keepdims=True).reshape(1, 1, ocp)

    def bn_lin_stats_kernel(h_ref, sc_ref, sh_ref, w_ref, b_ref,
                            y_ref, s1_ref, s2_ref):
        h = jnp.maximum(h_ref[...] * sc_ref[...] + sh_ref[...], 0.0)
        y = jnp.dot(h.astype(jnp.bfloat16), w_ref[...],
                    preferred_element_type=jnp.float32) + b_ref[...]
        y_ref[...] = y
        ym = jnp.where(row_mask(), y, 0.0)
        s1_ref[...] = jnp.sum(ym, axis=0, keepdims=True).reshape(1, 1, ocp)
        s2_ref[...] = jnp.sum(ym * ym, axis=0, keepdims=True).reshape(1, 1, ocp)

    def bn_lin_kernel(h_ref, sc_ref, sh_ref, w_ref, b_ref, o_ref):
        h = jnp.maximum(h_ref[...] * sc_ref[...] + sh_ref[...], 0.0)
        o_ref[...] = jnp.dot(h.astype(jnp.bfloat16), w_ref[...],
                             preferred_element_type=jnp.float32) + b_ref[...]

    def vec_spec(c):
        return pl.BlockSpec((1, c), lambda i: (0, 0))

    def wspec(shape):
        return pl.BlockSpec(shape, lambda i: (0, 0))     # weights VMEM-resident

    def rows_spec(c):
        return pl.BlockSpec((tile_rows, c), lambda i: (i, 0))

    stat_shape = jax.ShapeDtypeStruct((nt, 1, ocp), jnp.float32)
    stat_spec = pl.BlockSpec((1, 1, ocp), lambda i: (i, 0, 0))

    def fold(s1, s2, gamma, beta):
        mean = s1.sum(axis=0) * inv_n                    # (1, ocp), tiny JAX op
        var = jnp.maximum(s2.sum(axis=0) * inv_n - mean * mean, 0.0)
        scale = gamma * lax.rsqrt(var + EPS)
        shift = beta - mean * scale
        return scale, shift

    # Layer 1: linear + per-tile partial stats.
    h1, s1, s2 = pl.pallas_call(
        lin_stats_kernel,
        grid=(nt,),
        out_shape=(jax.ShapeDtypeStruct((n, ocp), jnp.float32), stat_shape, stat_shape),
        in_specs=[pl.BlockSpec((tile_rows, in_ch), lambda i: (i, 0)),
                  wspec(p["w1"].shape), vec_spec(ocp)],
        out_specs=(rows_spec(ocp), stat_spec, stat_spec),
        compiler_params=cparams,
    )(x2d, p["w1"], p["b1"])
    sc1, sh1 = fold(s1, s2, p["g1"], p["be1"])

    # Layer 2: BN1+ReLU applied, linear, per-tile partial stats.
    h2, s1, s2 = pl.pallas_call(
        bn_lin_stats_kernel,
        grid=(nt,),
        out_shape=(jax.ShapeDtypeStruct((n, ocp), jnp.float32), stat_shape, stat_shape),
        in_specs=[rows_spec(ocp), vec_spec(ocp), vec_spec(ocp),
                  wspec(p["w2"].shape), vec_spec(ocp)],
        out_specs=(rows_spec(ocp), stat_spec, stat_spec),
        compiler_params=cparams,
    )(h1, sc1, sh1, p["w2"], p["b2"])
    sc2, sh2 = fold(s1, s2, p["g2"], p["be2"])

    # Layer 3: BN2+ReLU applied, final linear.
    return pl.pallas_call(
        bn_lin_kernel,
        grid=(nt,),
        out_shape=jax.ShapeDtypeStruct((n, ncp), jnp.float32),
        in_specs=[rows_spec(ocp), vec_spec(ocp), vec_spec(ocp),
                  wspec(p["w3"].shape), vec_spec(ncp)],
        out_specs=rows_spec(ncp),
        compiler_params=cparams,
    )(h2, sc2, sh2, p["w3"], p["b3"])


def network_forward(x, packed, in_channels, num_classes, *, tiled=None, tile_rows=128):
    """Pallas implementation of Network.forward (training-mode BatchNorm)."""
    p = packed
    x2d = x.reshape(-1, in_channels).astype(jnp.float32)   # f32 in; cast in-kernel
    n = x2d.shape[0]
    vmem_limit = _vmem_limit_bytes()

    # Rough single-block residency (x + 2 hidden f32 acts + padded out + bf16
    # weights + vec slab), with 25% margin for compiler temporaries.
    est = int(1.25 * (n * (in_channels * 4 + 2 * p["ocp"] * 4 + p["ncp"] * 4)
                      + 2 * (p["w1"].size + p["w2"].size + p["w3"].size)
                      + 4 * p["vec"].size))
    must_tile = est > vmem_limit - 4 * _MIB
    if tiled is None:
        tiled = must_tile
    elif not tiled:
        assert not must_tile, "batch too large for single-block BN kernel; use tiled=True"

    if tiled:
        out = _tiled_forward(x2d, p, vmem_limit, tile_rows)
    else:
        out = _single_block_forward(x2d, p, vmem_limit)
    return out[:, :num_classes]


def init_params(key, in_channels, out_channels, num_classes):
    """Deterministic synthetic parameters (Linear weights stored pre-transposed)."""
    ks = jax.random.split(key, 6)

    def lin(kw, kb, fan_in, fan_out):
        bound = 1.0 / jnp.sqrt(jnp.float32(fan_in))
        w = jax.random.uniform(kw, (fan_in, fan_out), jnp.float32, -bound, bound)
        b = jax.random.uniform(kb, (fan_out,), jnp.float32, -bound, bound)
        return w, b

    w1, b1 = lin(ks[0], ks[1], in_channels, out_channels)
    w2, b2 = lin(ks[2], ks[3], out_channels, out_channels)
    w3, b3 = lin(ks[4], ks[5], out_channels, num_classes)
    return dict(
        w1=w1, b1=b1,
        g1=jnp.ones((out_channels,), jnp.float32),
        be1=jnp.zeros((out_channels,), jnp.float32),
        w2=w2, b2=b2,
        g2=jnp.ones((out_channels,), jnp.float32),
        be2=jnp.zeros((out_channels,), jnp.float32),
        w3=w3, b3=b3,
    )


def network_forward_ref(x, params, in_channels, matmul_dtype=jnp.float32):
    """Pure-JAX reference (optionally with matmul inputs cast to bf16)."""
    def mm(a, w):
        return jnp.dot(a.astype(matmul_dtype), w.astype(matmul_dtype),
                       preferred_element_type=jnp.float32)

    h = x.reshape(-1, in_channels)
    h = mm(h, params["w1"]) + params["b1"]
    m = h.mean(0, keepdims=True); v = ((h - m) ** 2).mean(0, keepdims=True)
    h = jnp.maximum((h - m) * lax.rsqrt(v + EPS) * params["g1"] + params["be1"], 0.0)
    h = mm(h, params["w2"]) + params["b2"]
    m = h.mean(0, keepdims=True); v = ((h - m) ** 2).mean(0, keepdims=True)
    h = jnp.maximum((h - m) * lax.rsqrt(v + EPS) * params["g2"] + params["be2"], 0.0)
    return mm(h, params["w3"]) + params["b3"]


if __name__ == "__main__":
    in_channels, out_channels, num_classes = 32, 64, 16
    key = jax.random.PRNGKey(0)
    k_x, k_x2, k_p = jax.random.split(key, 3)

    params = init_params(k_p, in_channels, out_channels, num_classes)
    packed = pack_params(params, num_classes)   # amortized one-time packing

    # Small case (input (2, 4, 32) -> flattened (8, 32)): single-block path.
    x = jax.random.normal(k_x, (2, 4, in_channels), jnp.float32)
    out = jax.block_until_ready(network_forward(x, packed, in_channels, num_classes))
    assert out.shape == (8, num_classes)
    ref_bf16 = network_forward_ref(x, params, in_channels, matmul_dtype=jnp.bfloat16)
    ref_f32 = network_forward_ref(x, params, in_channels)
    assert jnp.allclose(out, ref_bf16, atol=1e-2, rtol=1e-2), "single-block vs bf16 ref"
    assert jnp.allclose(out, ref_f32, atol=1e-1, rtol=1e-1), "single-block vs f32 ref"

    # Larger case: exercise the tiled two-pass-BN path (row-parallel grid),
    # with a tile size that leaves a partial (row-masked) final tile.
    x_big = jax.random.normal(k_x2, (25, 8, in_channels), jnp.float32)   # -> (200, 32)
    out_big = jax.block_until_ready(
        network_forward(x_big, packed, in_channels, num_classes,
                        tiled=True, tile_rows=64))
    assert out_big.shape == (200, num_classes)
    ref_big_bf16 = network_forward_ref(x_big, params, in_channels,
                                       matmul_dtype=jnp.bfloat16)
    ref_big_f32 = network_forward_ref(x_big, params, in_channels)
    assert jnp.allclose(out_big, ref_big_bf16, atol=1e-2, rtol=1e-2), "tiled vs bf16 ref"
    assert jnp.allclose(out_big, ref_big_f32, atol=1e-1, rtol=1e-1), "tiled vs f32 ref"

    print("KERNEL_OK")
</pallas_src>

<mosaic_0001>
module attributes {stable_mosaic.version = 11 : i64} {
  func.func @kernel(%arg0: memref<8x32xf32, #tpu.memory_space<vmem>>, %arg1: memref<32x128xbf16, #tpu.memory_space<vmem>>, %arg2: memref<128x128xbf16, #tpu.memory_space<vmem>>, %arg3: memref<128x128xbf16, #tpu.memory_space<vmem>>, %arg4: memref<8x128xf32, #tpu.memory_space<vmem>>, %arg5: memref<8x128xf32, #tpu.memory_space<vmem>>) attributes {dimension_semantics = [], scalar_prefetch = 0 : i64, scratch_operands = 0 : i64, tpu.core_type = #tpu.core_type<tc>} {
    %c0 = arith.constant 0 : index
    %c0_0 = arith.constant 0 : index
    %0 = vector.load %arg4[%c0, %c0_0] : memref<8x128xf32, #tpu.memory_space<vmem>>, vector<8x128xf32>
    %1 = vector.extract_strided_slice %0 {offsets = [0, 0], sizes = [1, 128], strides = [1, 1]} : vector<8x128xf32> to vector<1x128xf32>
    %2 = vector.extract_strided_slice %0 {offsets = [1, 0], sizes = [1, 128], strides = [1, 1]} : vector<8x128xf32> to vector<1x128xf32>
    %3 = vector.extract_strided_slice %0 {offsets = [2, 0], sizes = [1, 128], strides = [1, 1]} : vector<8x128xf32> to vector<1x128xf32>
    %4 = vector.extract_strided_slice %0 {offsets = [3, 0], sizes = [1, 128], strides = [1, 1]} : vector<8x128xf32> to vector<1x128xf32>
    %5 = vector.extract_strided_slice %0 {offsets = [4, 0], sizes = [1, 128], strides = [1, 1]} : vector<8x128xf32> to vector<1x128xf32>
    %6 = vector.extract_strided_slice %0 {offsets = [5, 0], sizes = [1, 128], strides = [1, 1]} : vector<8x128xf32> to vector<1x128xf32>
    %7 = vector.extract_strided_slice %0 {offsets = [6, 0], sizes = [1, 128], strides = [1, 1]} : vector<8x128xf32> to vector<1x128xf32>
    %c0_1 = arith.constant 0 : index
    %c0_2 = arith.constant 0 : index
    %8 = vector.load %arg0[%c0_1, %c0_2] : memref<8x32xf32, #tpu.memory_space<vmem>>, vector<8x32xf32>
    %9 = arith.truncf %8 : vector<8x32xf32> to vector<8x32xbf16>
    %c0_3 = arith.constant 0 : index
    %c0_4 = arith.constant 0 : index
    %10 = vector.load %arg1[%c0_3, %c0_4] : memref<32x128xbf16, #tpu.memory_space<vmem>>, vector<32x128xbf16>
    %cst = arith.constant dense<0.000000e+00> : vector<8x128xf32>
    %11 = tpu.matmul %9, %10, %cst {dimension_numbers = #tpu.dot_dimension_numbers<[1], [0], [0], [1], [0, 0, 1, 1], [], []>} : vector<8x32xbf16>, vector<32x128xbf16>, vector<8x128xf32> -> vector<8x128xf32>
    %12 = vector.broadcast %1 : vector<1x128xf32> to vector<8x128xf32>
    %13 = arith.addf %11, %12 : vector<8x128xf32>
    %cst_5 = arith.constant dense<0.000000e+00> : vector<128xf32>
    %14 = vector.multi_reduction <add>, %13, %cst_5 [0] : vector<8x128xf32> to vector<128xf32>
    %15 = vector.shape_cast %14 : vector<128xf32> to vector<1x128xf32>
    %16 = arith.mulf %13, %13 : vector<8x128xf32>
    %cst_6 = arith.constant dense<0.000000e+00> : vector<128xf32>
    %17 = vector.multi_reduction <add>, %16, %cst_6 [0] : vector<8x128xf32> to vector<128xf32>
    %18 = vector.shape_cast %17 : vector<128xf32> to vector<1x128xf32>
    %cst_7 = arith.constant 1.250000e-01 : f32
    %19 = vector.broadcast %cst_7 : f32 to vector<1x128xf32>
    %20 = arith.mulf %15, %19 : vector<1x128xf32>
    %cst_8 = arith.constant 1.250000e-01 : f32
    %21 = vector.broadcast %cst_8 : f32 to vector<1x128xf32>
    %22 = arith.mulf %18, %21 : vector<1x128xf32>
    %23 = arith.mulf %20, %20 : vector<1x128xf32>
    %24 = arith.subf %22, %23 : vector<1x128xf32>
    %cst_9 = arith.constant 0.000000e+00 : f32
    %25 = vector.broadcast %cst_9 : f32 to vector<1x128xf32>
    %26 = arith.maximumf %24, %25 : vector<1x128xf32>
    %cst_10 = arith.constant 9.99999974E-6 : f32
    %27 = vector.broadcast %cst_10 : f32 to vector<1x128xf32>
    %28 = arith.addf %26, %27 : vector<1x128xf32>
    %29 = math.rsqrt %28 : vector<1x128xf32>
    %30 = arith.mulf %2, %29 : vector<1x128xf32>
    %31 = arith.mulf %20, %30 : vector<1x128xf32>
    %32 = arith.subf %3, %31 : vector<1x128xf32>
    %33 = vector.broadcast %30 : vector<1x128xf32> to vector<8x128xf32>
    %34 = arith.mulf %13, %33 : vector<8x128xf32>
    %35 = vector.broadcast %32 : vector<1x128xf32> to vector<8x128xf32>
    %36 = arith.addf %34, %35 : vector<8x128xf32>
    %cst_11 = arith.constant 0.000000e+00 : f32
    %37 = vector.broadcast %cst_11 : f32 to vector<8x128xf32>
    %38 = arith.maximumf %36, %37 : vector<8x128xf32>
    %39 = arith.truncf %38 : vector<8x128xf32> to vector<8x128xbf16>
    %c0_12 = arith.constant 0 : index
    %c0_13 = arith.constant 0 : index
    %40 = vector.load %arg2[%c0_12, %c0_13] : memref<128x128xbf16, #tpu.memory_space<vmem>>, vector<128x128xbf16>
    %cst_14 = arith.constant dense<0.000000e+00> : vector<8x128xf32>
    %41 = tpu.matmul %39, %40, %cst_14 {dimension_numbers = #tpu.dot_dimension_numbers<[1], [0], [0], [1], [0, 0, 1, 1], [], []>} : vector<8x128xbf16>, vector<128x128xbf16>, vector<8x128xf32> -> vector<8x128xf32>
    %42 = vector.broadcast %4 : vector<1x128xf32> to vector<8x128xf32>
    %43 = arith.addf %41, %42 : vector<8x128xf32>
    %cst_15 = arith.constant dense<0.000000e+00> : vector<128xf32>
    %44 = vector.multi_reduction <add>, %43, %cst_15 [0] : vector<8x128xf32> to vector<128xf32>
    %45 = vector.shape_cast %44 : vector<128xf32> to vector<1x128xf32>
    %46 = arith.mulf %43, %43 : vector<8x128xf32>
    %cst_16 = arith.constant dense<0.000000e+00> : vector<128xf32>
    %47 = vector.multi_reduction <add>, %46, %cst_16 [0] : vector<8x128xf32> to vector<128xf32>
    %48 = vector.shape_cast %47 : vector<128xf32> to vector<1x128xf32>
    %cst_17 = arith.constant 1.250000e-01 : f32
    %49 = vector.broadcast %cst_17 : f32 to vector<1x128xf32>
    %50 = arith.mulf %45, %49 : vector<1x128xf32>
    %cst_18 = arith.constant 1.250000e-01 : f32
    %51 = vector.broadcast %cst_18 : f32 to vector<1x128xf32>
    %52 = arith.mulf %48, %51 : vector<1x128xf32>
    %53 = arith.mulf %50, %50 : vector<1x128xf32>
    %54 = arith.subf %52, %53 : vector<1x128xf32>
    %cst_19 = arith.constant 0.000000e+00 : f32
    %55 = vector.broadcast %cst_19 : f32 to vector<1x128xf32>
    %56 = arith.maximumf %54, %55 : vector<1x128xf32>
    %cst_20 = arith.constant 9.99999974E-6 : f32
    %57 = vector.broadcast %cst_20 : f32 to vector<1x128xf32>
    %58 = arith.addf %56, %57 : vector<1x128xf32>
    %59 = math.rsqrt %58 : vector<1x128xf32>
    %60 = arith.mulf %5, %59 : vector<1x128xf32>
    %61 = arith.mulf %50, %60 : vector<1x128xf32>
    %62 = arith.subf %6, %61 : vector<1x128xf32>
    %63 = vector.broadcast %60 : vector<1x128xf32> to vector<8x128xf32>
    %64 = arith.mulf %43, %63 : vector<8x128xf32>
    %65 = vector.broadcast %62 : vector<1x128xf32> to vector<8x128xf32>
    %66 = arith.addf %64, %65 : vector<8x128xf32>
    %cst_21 = arith.constant 0.000000e+00 : f32
    %67 = vector.broadcast %cst_21 : f32 to vector<8x128xf32>
    %68 = arith.maximumf %66, %67 : vector<8x128xf32>
    %69 = arith.truncf %68 : vector<8x128xf32> to vector<8x128xbf16>
    %c0_22 = arith.constant 0 : index
    %c0_23 = arith.constant 0 : index
    %70 = vector.load %arg3[%c0_22, %c0_23] : memref<128x128xbf16, #tpu.memory_space<vmem>>, vector<128x128xbf16>
    %cst_24 = arith.constant dense<0.000000e+00> : vector<8x128xf32>
    %71 = tpu.matmul %69, %70, %cst_24 {dimension_numbers = #tpu.dot_dimension_numbers<[1], [0], [0], [1], [0, 0, 1, 1], [], []>} : vector<8x128xbf16>, vector<128x128xbf16>, vector<8x128xf32> -> vector<8x128xf32>
    %72 = vector.broadcast %7 : vector<1x128xf32> to vector<8x128xf32>
    %73 = arith.addf %71, %72 : vector<8x128xf32>
    %c0_25 = arith.constant 0 : index
    %c0_26 = arith.constant 0 : index
    %74 = vector.load %arg5[%c0_25, %c0_26] : memref<8x128xf32, #tpu.memory_space<vmem>>, vector<8x128xf32>
    tpu.vector_store %arg5[%c0_25, %c0_26], %73 {strides = array<i32>} : memref<8x128xf32, #tpu.memory_space<vmem>>, vector<8x128xf32>,
    return
  }
}

</mosaic_0001>

<bundles_post_ra>
// kernel: tpu_custom_call.1
= control target key start
LH: loop header
LB: loop body
LE: loop exit
PB: predicated region body
PF: predicated region fallthrough
CT: control target
= control target key end

     0   :  { %10 = vsyncpa [#allocation3], 0  ;;  %s817_s0 = inlined_call_operand.hbm [shape: f32[8,32], index: 0, kind: input, shape index: {}]   ;;  %s818_s1 = inlined_call_operand.hbm [shape: bf16[32,128], index: 1, kind: input, shape index: {}]   ;;  %s819_s2 = inlined_call_operand.hbm [shape: bf16[128,128], index: 2, kind: input, shape index: {}]   ;;  %s820_s3 = inlined_call_operand.hbm [shape: bf16[128,128], index: 3, kind: input, shape index: {}]   ;;  %s821_s4 = inlined_call_operand.hbm [shape: f32[8,128], index: 4, kind: input, shape index: {}]   ;;  %s822_s5 = inlined_call_operand.hbm [shape: f32[8,128], index: 5, kind: output, shape index: {}]  }
   0x1   :  { %11 = vsyncpa [#allocation6], 0 }
   0x2   :  { %12 = vsyncpa [#allocation9], 0 }
   0x3   :  { %13 = vsyncpa [#allocation4], 0  ;;  %s711_s18 = smov [#allocation5]  }
   0x4   :  { %s29_s19 = sshll.u32 %s711_s18, 4  ;;  %s30_s19 = int_to_ptr.vmem [resolvable:$true] %s29_s19 }
   0x5   :  { %s591_s20 = scalar_lea.vmem %s30_s19, 256  ;;  %p596_p1 = scmp.lt.s32.totalorder %s30_s19, %s30_s19 }
   0x6   :  { %p592_p0 = scmp.ne.s32.totalorder %s30_s19, %s591_s20  ;;  %p597_p2 = scmp.lt.s32.totalorder %s591_s20, %s591_s20 }
   0x8   :  { %p598_p3 = por %p597_p2, %p596_p1 }
   0xa   :  { %p599_p4 = pnand %p598_p3, %p592_p0 }
   0xc   :  { %602 = shalt.err (!%p599_p4)
}
   0xd   :  { %s712_s21 = smov 64   ;;  %s713_s22 = smov 4  }
   0xe   :  { %35 = dma.hbm_to_vmem [thread:$0]  %s818_s1, 256, %s30_s19, [#allocation6], %s712_s21, %s712_s21, %s713_s22  }
   0xf   :  { %s714_s25 = smov [#allocation8]   ;;  %s715_s27 = smov [#allocation2]  }
  0x10   :  { %s53_s26 = sshll.u32 %s714_s25, 4  ;;  %s20_s28 = sshll.u32 %s715_s27, 4  ;;  %s54_s26 = int_to_ptr.vmem [resolvable:$true] %s53_s26  ;;  %s21_s28 = int_to_ptr.vmem [resolvable:$true] %s20_s28 }
  0x11   :  { %s611_s29 = scalar_lea.vmem %s54_s26, 1024  ;;  %p616_p6 = scmp.lt.s32.totalorder %s54_s26, %s54_s26 }
  0x12   :  { %p612_p5 = scmp.ne.s32.totalorder %s54_s26, %s611_s29  ;;  %p617_p7 = scmp.lt.s32.totalorder %s611_s29, %s611_s29 }
  0x14   :  { %p618_p8 = por %p617_p7, %p616_p6 }
  0x16   :  { %p619_p9 = pnand %p618_p8, %p612_p5 }
  0x18   :  { %622 = shalt.err (!%p619_p9)
}
  0x19   :  { %59 = dma.hbm_to_vmem [thread:$0]  %s820_s3, 1024, %s54_s26, [#allocation9], %s712_s21, %s712_s21, %s713_s22  }
  0x1a   :  { %s631_s1 = scalar_lea.vmem %s21_s28, 128  ;;  %p636_p11 = scmp.lt.s32.totalorder %s21_s28, %s21_s28 }
  0x1b   :  { %p632_p10 = scmp.ne.s32.totalorder %s21_s28, %s631_s1  ;;  %p637_p12 = scmp.lt.s32.totalorder %s631_s1, %s631_s1 }
  0x1d   :  { %p638_p13 = por %p637_p12, %p636_p11 }
  0x1f   :  { %p639_p0 = pnand %p638_p13, %p632_p10 }
  0x21   :  { %642 = shalt.err (!%p639_p0)
}
  0x22   :  { %23 = dma.hbm_to_vmem [thread:$0]  %s817_s0, 128, %s21_s28, [#allocation3]  }
  0x23   :  { %s716_s9 = smov [#allocation7]   ;;  %s717_s11 = smov [#allocation10]  }
  0x24   :  { %s41_s10 = sshll.u32 %s716_s9, 4  ;;  %s66_s12 = sshll.u32 %s717_s11, 4  ;;  %s42_s10 = int_to_ptr.vmem [resolvable:$true] %s41_s10  ;;  %s67_s12 = int_to_ptr.vmem [resolvable:$true] %s66_s12 }
  0x25   :  { %s651_s13 = scalar_lea.vmem %s42_s10, 1024  ;;  %p656_p2 = scmp.lt.s32.totalorder %s42_s10, %s42_s10 }
  0x26   :  { %p652_p1 = scmp.ne.s32.totalorder %s42_s10, %s651_s13  ;;  %p657_p3 = scmp.lt.s32.totalorder %s651_s13, %s651_s13 }
  0x28   :  { %p658_p4 = por %p657_p3, %p656_p2 }
  0x2a   :  { %p659_p5 = pnand %p658_p4, %p652_p1 }
  0x2c   :  { %662 = shalt.err (!%p659_p5)
}
  0x2d   :  { %47 = dma.hbm_to_vmem [thread:$0]  %s819_s2, 1024, %s42_s10, [#allocation6], %s712_s21, %s712_s21, %s713_s22  }
  0x2e   :  { %s671_s0 = scalar_lea.vmem %s67_s12, 128  ;;  %p676_p7 = scmp.lt.s32.totalorder %s67_s12, %s67_s12 }
  0x2f   :  { %p672_p6 = scmp.ne.s32.totalorder %s67_s12, %s671_s0  ;;  %p677_p8 = scmp.lt.s32.totalorder %s671_s0, %s671_s0 }
  0x31   :  { %p678_p9 = por %p677_p8, %p676_p7 }
  0x33   :  { %p679_p10 = pnand %p678_p9, %p672_p6 }
  0x35   :  { %682 = shalt.err (!%p679_p10)
}
  0x36   :  { %69 = dma.hbm_to_vmem [thread:$0]  %s821_s4, 128, %s67_s12, [#allocation9]  }
  0x37   :  { %703 = dma.done.wait [#allocation3], 128  }
  0x38   :  { %704 = vsyncadd [#allocation3], 4294967168 }
  0x39   :  { %705 = dma.done.wait [#allocation6], 1280  }
  0x3a   :  { %706 = vsyncadd [#allocation6], 4294966016 }
  0x3b   :  { %707 = dma.done.wait [#allocation9], 1152  }
  0x3c   :  { %708 = vsyncadd [#allocation9], 4294966144  ;;  %v718_v0 = vmov 0.0   ;;  %vm719_vm0 = vmmov 0   ;;  %v561_v1 = vld [vmem:[#allocation5 + $0x8] sm:$0xff]   ;;  %v562_v2 = vld [vmem:[#allocation5] sm:$0xff]   ;;  %v93_v13 = vlaneseq }
  0x3d   :  { %503 = vmatprep.subr.bf16.mxu0 %v718_v0  ;;  %507 = vmatprep.mubr.msk.bf16.mxu0 %vm719_vm0, %v718_v0  ;;  %v87_v3 = vld [vmem:[#allocation2] sm:$0xff]  ;;  %vm109_vm1 = vcmask 261120   ;;  %v563_v5 = vld [vmem:[#allocation7 + $0x38] sm:$0xff]   ;;  %v564_v6 = vld [vmem:[#allocation7 + $0x30] sm:$0xff]   ;;  %s720_s2 = smov [#allocation11]  }
  0x3e   :  { %511 = vmatprep.subr.bf16.mxu1 %v718_v0  ;;  %527 = vmatprep.mubr.msk.bf16.mxu1 %vm719_vm0, %v718_v0  ;;  %v88_v4 = vpack.c.bf16 %v87_v3, %v87_v3  ;;  %v565_v7 = vld [vmem:[#allocation7 + $0x28] sm:$0xff]   ;;  %v566_v8 = vld [vmem:[#allocation7 + $0x20] sm:$0xff]   ;;  %v567_v9 = vld [vmem:[#allocation7 + $0x18] sm:$0xff]   ;;  %v789_v14 = vshrl.u32 %v93_v13, 7  ;;  %s452_s4 = sshll.u32 %s720_s2, 4  ;;  %s453_s4 = int_to_ptr.vmem [resolvable:$true] %s452_s4 }
  0x3f   :  { %504 = vmatpush3.bf16.msra.mxu0 %v561_v1  ;;  %512 = vmatpush3.bf16.msra.mxu1 %v563_v5  ;;  %v568_v10 = vld [vmem:[#allocation7 + $0x10] sm:$0xff]   ;;  %v569_v11 = vld [vmem:[#allocation7 + $0x8] sm:$0xff]   ;;  %v570_v12 = vld [vmem:[#allocation7] sm:$0xff]   ;;  %s683_s17 = scalar_lea.vmem %s453_s4, 128  ;;  %p688_p12 = scmp.lt.s32.totalorder %s453_s4, %s453_s4 }
  0x40   :  { %505 = vmatprep.subr.bf16.mxu0 %v718_v0  ;;  %513 = vmatprep.subr.bf16.mxu1 %v718_v0  ;;  %v95_v15 = vsub.s32 0, %v789_v14  ;;  %v792_v16 = vld [vmem:[#allocation10] sm:$0xff]  ;;  %v181_v44 = vsub.s32 1, %v789_v14  ;;  %v186_v48 = vsub.s32 2, %v789_v14  ;;  %v571_v55 = vld [vmem:[#allocation8 + $0x38] sm:$0xff]   ;;  %v572_v56 = vld [vmem:[#allocation8 + $0x30] sm:$0xff]   ;;  %p684_p11 = scmp.ne.s32.totalorder %s453_s4, %s683_s17  ;;  %p689_p13 = scmp.lt.s32.totalorder %s683_s17, %s683_s17 }
  0x41   :  { %v573_v57 = vld [vmem:[#allocation8 + $0x28] sm:$0xff]   ;;  %v574_v58 = vld [vmem:[#allocation8 + $0x20] sm:$0xff]   ;;  %v575_v59 = vld [vmem:[#allocation8 + $0x18] sm:$0xff]   ;;  %v209_v63 = vsub.s32 3, %v789_v14 }
  0x42   :  { %v96_v17 = vrot.slane %v792_v16, %v95_v15  ;;  %v576_v60 = vld [vmem:[#allocation8 + $0x10] sm:$0xff]   ;;  %v577_v61 = vld [vmem:[#allocation8 + $0x8] sm:$0xff]   ;;  %v578_v62 = vld [vmem:[#allocation8] sm:$0xff]   ;;  %p690_p0 = por %p689_p13, %p688_p12 }
  0x43   :  { %506 = vmatpush3.bf16.msra.mxu0 %v562_v2  ;;  %514 = vmatpush3.bf16.msra.mxu1 %v564_v6  ;;  %v210_v1 = vrot.slane %v792_v16, %v209_v63 }
  0x44   :  { %531 = vmatprep.subr.bf16.mxu0 %v718_v0  ;;  %515 = vmatprep.subr.bf16.mxu1 %v718_v0  ;;  %p691_p1 = pnand %p690_p0, %p684_p11 }
  0x46   :  { %508 = vmatmul.mubr.msk.bf16.vlgmr.msra.gmra.mxu0 %vm109_vm1, %v88_v4 }
  0x47   :  { %547 = vmatprep.mubr.msk.bf16.mxu0 %vm719_vm0, %v718_v0  ;;  %516 = vmatpush3.bf16.msra.mxu1 %v565_v7 }
  0x48   :  { %517 = vmatprep.subr.bf16.mxu1 %v718_v0  ;;  %532 = vmatpush3.bf16.msra.mxu0 %v571_v55 }
  0x49   :  { %533 = vmatprep.subr.bf16.mxu0 %v718_v0 }
  0x4b   :  { %518 = vmatpush3.bf16.msra.mxu1 %v566_v8 }
  0x4c   :  { %519 = vmatprep.subr.bf16.mxu1 %v718_v0  ;;  %534 = vmatpush3.bf16.msra.mxu0 %v572_v56 }
  0x4d   :  { %535 = vmatprep.subr.bf16.mxu0 %v718_v0 }
  0x4f   :  { %520 = vmatpush3.bf16.msra.mxu1 %v567_v9 }
  0x50   :  { %521 = vmatprep.subr.bf16.mxu1 %v718_v0  ;;  %536 = vmatpush3.bf16.msra.mxu0 %v573_v57 }
  0x51   :  { %537 = vmatprep.subr.bf16.mxu0 %v718_v0 }
  0x53   :  { %522 = vmatpush3.bf16.msra.mxu1 %v568_v10 }
  0x54   :  { %523 = vmatprep.subr.bf16.mxu1 %v718_v0  ;;  %538 = vmatpush3.bf16.msra.mxu0 %v574_v58 }
  0x55   :  { %539 = vmatprep.subr.bf16.mxu0 %v718_v0 }
  0x57   :  { %524 = vmatpush3.bf16.msra.mxu1 %v569_v11 }
  0x58   :  { %525 = vmatprep.subr.bf16.mxu1 %v718_v0  ;;  %540 = vmatpush3.bf16.msra.mxu0 %v575_v59 }
  0x59   :  { %541 = vmatprep.subr.bf16.mxu0 %v718_v0 }
  0x5b   :  { %526 = vmatpush3.bf16.msra.mxu1 %v570_v12 }
  0x5c   :  { %542 = vmatpush3.bf16.msra.mxu0 %v576_v60 }
  0x5d   :  { %543 = vmatprep.subr.bf16.mxu0 %v718_v0 }
  0x60   :  { %544 = vmatpush3.bf16.msra.mxu0 %v577_v61 }
  0x61   :  { %545 = vmatprep.subr.bf16.mxu0 %v718_v0 }
  0x64   :  { %546 = vmatpush3.bf16.msra.mxu0 %v578_v62 }
 0x106   :  { %v147_v18 = vpop.f32.mrf.mxu0 }
 0x107   :  { %v148_v19 = vadd.f32 %v147_v18, %v96_v17 }
 0x108   :  { %v509_v20 = vpop.f32.mrf.mxu0 }
 0x109   :  { %v153_v21 = vrot.slane %v148_v19, 4  ;;  %v159_v22 = vmul.f32 %v148_v19, %v148_v19 }
 0x10a   :  { %v150_v23 = vpop.f32.mrf.mxu0 }
 0x10b   :  { %v154_v24 = vadd.f32 %v153_v21, %v148_v19  ;;  %v160_v25 = vrot.slane %v159_v22, 4 }
 0x10c   :  { %v510_v26 = vpop.f32.mrf.mxu0 }
 0x10d   :  { %v155_v27 = vrot.slane %v154_v24, 2  ;;  %v161_v28 = vadd.f32 %v160_v25, %v159_v22 }
 0x10f   :  { %v156_v29 = vadd.f32 %v155_v27, %v154_v24  ;;  %v162_v30 = vrot.slane %v161_v28, 2 }
 0x111   :  { %v157_v31 = vrot.slane %v156_v29, 1  ;;  %v163_v32 = vadd.f32 %v162_v30, %v161_v28 }
 0x113   :  { %v158_v33 = vadd.f32 %v157_v31, %v156_v29  ;;  %v164_v34 = vrot.slane %v163_v32, 1  ;;  %v327_v29 = vsub.s32 4, %v789_v14 }
 0x115   :  { %v165_v35 = vadd.f32 %v164_v34, %v163_v32  ;;  %v166_v36 = vmul.f32 0.125, %v158_v33  ;;  %v332_v33 = vsub.s32 5, %v789_v14 }
 0x117   :  { %v167_v37 = vmul.f32 0.125, %v165_v35  ;;  %v168_v38 = vmul.f32 %v166_v36, %v166_v36 }
 0x119   :  { %v169_v39 = vsub.f32 %v167_v37, %v168_v38 }
 0x11b   :  { %v170_v40 = vmax.f32 %v169_v39, 0.0 }
 0x11d   :  { %v171_v41 = vadd.f32 1e-05, %v170_v40  ;;  %v355_v40 = vsub.s32 6, %v789_v14 }
 0x11f   :  { %579 = vrsqrt.f32 %v171_v41  ;;  %v356_v41 = vrot.slane %v792_v16, %v355_v40 }
 0x12c   :  { %v580_v42 = vpop.eup %579 }
 0x12d   :  { %v173_v43 = vmul.f32 %v580_v42, %v792_v16 }
 0x12f   :  { %v174_v45 = vmul.f32 %v173_v43, %v166_v36  ;;  %v182_v47 = vrot.slane %v173_v43, %v181_v44 }
 0x131   :  { %v176_v46 = vrot.slane %v174_v45, 7  ;;  %v183_v50 = vmul.f32 %v182_v47, %v148_v19 }
 0x133   :  { %v178_v49 = vsub.f32 %v792_v16, %v176_v46 }
 0x135   :  { %v187_v51 = vrot.slane %v178_v49, %v186_v48 }
 0x137   :  { %v188_v52 = vadd.f32 %v187_v51, %v183_v50 }
 0x139   :  { %v189_v53 = vmax.f32 %v188_v52, 0.0 }
 0x13b   :  { %v190_v54 = vpack.c.bf16 %v189_v53, %v189_v53 }
 0x13d   :  { %528 = vmatmul.mubr.bf16.vlgmr.msra.gmra.mxu1 %v190_v54 }
 0x1fd   :  { %v293_v2 = vpop.f32.mrf.mxu1 }
 0x1fe   :  { %v294_v3 = vadd.f32 %v293_v2, %v210_v1 }
 0x1ff   :  { %v529_v4 = vpop.f32.mrf.mxu1 }
 0x200   :  { %v299_v5 = vrot.slane %v294_v3, 4  ;;  %v305_v6 = vmul.f32 %v294_v3, %v294_v3 }
 0x201   :  { %v296_v7 = vpop.f32.mrf.mxu1 }
 0x202   :  { %v300_v8 = vadd.f32 %v299_v5, %v294_v3  ;;  %v306_v9 = vrot.slane %v305_v6, 4 }
 0x203   :  { %v530_v10 = vpop.f32.mrf.mxu1 }
 0x204   :  { %v301_v11 = vrot.slane %v300_v8, 2  ;;  %v307_v12 = vadd.f32 %v306_v9, %v305_v6 }
 0x206   :  { %v302_v13 = vadd.f32 %v301_v11, %v300_v8  ;;  %v308_v15 = vrot.slane %v307_v12, 2 }
 0x208   :  { %v303_v17 = vrot.slane %v302_v13, 1  ;;  %v309_v0 = vadd.f32 %v308_v15, %v307_v12 }
 0x20a   :  { %v304_v18 = vadd.f32 %v303_v17, %v302_v13  ;;  %v310_v19 = vrot.slane %v309_v0, 1 }
 0x20c   :  { %v311_v20 = vadd.f32 %v310_v19, %v309_v0  ;;  %v312_v21 = vmul.f32 0.125, %v304_v18 }
 0x20e   :  { %v313_v22 = vmul.f32 0.125, %v311_v20  ;;  %v314_v23 = vmul.f32 %v312_v21, %v312_v21 }
 0x210   :  { %v315_v24 = vsub.f32 %v313_v22, %v314_v23 }
 0x212   :  { %v316_v25 = vmax.f32 %v315_v24, 0.0 }
 0x214   :  { %v317_v26 = vadd.f32 1e-05, %v316_v25 }
 0x216   :  { %581 = vrsqrt.f32 %v317_v26 }
 0x223   :  { %v582_v27 = vpop.eup %581 }
 0x224   :  { %v319_v28 = vmul.f32 %v582_v27, %v792_v16 }
 0x226   :  { %v320_v30 = vmul.f32 %v319_v28, %v312_v21  ;;  %v328_v31 = vrot.slane %v319_v28, %v327_v29 }
 0x228   :  { %v322_v32 = vrot.slane %v320_v30, 7  ;;  %v329_v35 = vmul.f32 %v328_v31, %v294_v3 }
 0x22a   :  { %v324_v34 = vsub.f32 %v792_v16, %v322_v32 }
 0x22c   :  { %v333_v36 = vrot.slane %v324_v34, %v332_v33 }
 0x22e   :  { %v334_v37 = vadd.f32 %v333_v36, %v329_v35 }
 0x230   :  { %v335_v38 = vmax.f32 %v334_v37, 0.0 }
 0x232   :  { %v336_v39 = vpack.c.bf16 %v335_v38, %v335_v38 }
 0x234   :  { %548 = vmatmul.mubr.bf16.vlgmr.msra.gmra.mxu0 %v336_v39 }
 0x2f4   :  { %v439_v42 = vpop.f32.mrf.mxu0 }
 0x2f5   :  { %v440_v43 = vadd.f32 %v439_v42, %v356_v41 }
 0x2f6   :  { %v549_v44 = vpop.f32.mrf.mxu0 }
 0x2f7   :  { %445 = vst [vmem:[#allocation11] sm:$0xff] %v440_v43 }
 0x2f8   :  { %v442_v45 = vpop.f32.mrf.mxu0 }
 0x2f9   :  { %694 = shalt.err (!%p691_p1)
}
 0x2fa   :  { %455 = dma.vmem_to_hbm [thread:$0]  %s453_s4, 128, %s822_s5, [#allocation4]   ;;  %v550_v14 = vpop.f32.mrf.mxu0 }
 0x2fb   :  { %709 = dma.done.wait [#allocation4], 128  }
 0x2fc   :  { %710 = vsyncadd [#allocation4], 4294967168 }
 0x2fd   :  { %459 = vsyncpa [#allocation3], 1 }
 0x2fe   :  { %460 = vsyncpa [#allocation6], 1 }
 0x2ff   :  { %461 = vsyncpa [#allocation9], 1 }
 0x300   :  { %462 = vsyncpa [#allocation4], 1 }

</bundles_post_ra>
